<compile_context>
chip_gen: v7x
topology: tpu7x:2x2x1
jax: 0.10.0
libtpu: 0.0.40
codegen_flags: <defaults>
</compile_context>

<pallas_src>
import functools
import math

import numpy as np
import jax
import jax.numpy as jnp
from jax import lax
from jax.experimental import pallas as pl
from jax.experimental.pallas import tpu as pltpu

R_CONST = 10.9861
P0_CONST = 0.5
K_CONST = 1.0
BETA_CONST = 1.5


def _round_up(x, m):
    return (x + m - 1) // m * m


def _cdiv(a, b):
    return -(-a // b)


def _g_tanh(x):
    # K*P0*exp(-R*x) / (K + P0*(exp(-R*x) - 1))  ==  sigmoid(-R*x)   (K=1, P0=0.5)
    #                                            ==  0.5*(1 - tanh(0.5*R*x))
    return 0.5 * (1.0 - jnp.tanh((0.5 * R_CONST) * x))


def _g_scalar(x):
    return 0.5 * (1.0 - math.tanh(0.5 * R_CONST * x))


def _logistic_partials_kernel(preds_ref, labels_ref, lw_ref, out_ref, *,
                              alpha_t, ignore_index, equal_alpha):
    """One grid step over TM samples, fully vreg-dense.

    preds_ref : [C, TR, 128] f32  (class-major; samples dense on sublanes+lanes)
    labels_ref: [TR, 128]    i32
    lw_ref    : [TR, 128]    f32
    out_ref   : [R_out, 128] f32  per-tile partial sums, single lane-dense store
    """
    C = preds_ref.shape[0]

    labels = labels_ref[...]
    lw = lw_ref[...]
    mask = (labels != ignore_index).astype(jnp.float32)
    lwm = lw * mask

    # Statically unrolled class axis: everything below is a dense [TR, 128] slab.
    logits = [preds_ref[c] for c in range(C)]
    mx = logits[0]
    for c in range(1, C):
        mx = jnp.maximum(mx, logits[c])
    exs = [jnp.exp(l - mx) for l in logits]
    denom = exs[0]
    for c in range(1, C):
        denom = denom + exs[c]

    onehots = [labels == c for c in range(C)]
    num = jnp.where(onehots[0], exs[0], 0.0)
    for c in range(1, C):
        num = jnp.where(onehots[c], exs[c], num)

    # Softmax prob of the label class: approx EUP reciprocal + 1 Newton step.
    r = pl.reciprocal(denom, approx=True)
    r = r * (2.0 - denom * r)
    ps = num * r                                       # [TR, 128]

    rows = []                                          # list of (1, 128) lane-vectors
    if equal_alpha:
        G = _g_tanh(ps - alpha_t[0])                   # one tanh per sample
        rows.append(jnp.sum(lwm * G, axis=0, keepdims=True))    # A partial
        rows.append(jnp.sum(mask, axis=0, keepdims=True))       # n_kept partial
        rows.append(jnp.sum(lwm, axis=0, keepdims=True))        # S partial
    else:
        for c in range(C):
            Gc = _g_tanh(ps - alpha_t[c])
            rows.append(jnp.sum(lwm * Gc, axis=0, keepdims=True))               # A_c
        for c in range(C):
            rows.append(jnp.sum(mask * onehots[c].astype(jnp.float32),
                                axis=0, keepdims=True))                          # n_c
        rows.append(jnp.sum(lwm, axis=0, keepdims=True))                         # S

    R_out = out_ref.shape[0]
    row_ids = lax.broadcasted_iota(jnp.int32, (R_out, 128), 0)
    packed = jnp.zeros((R_out, 128), jnp.float32)
    for rr, vec in enumerate(rows):
        packed = jnp.where(row_ids == rr, vec, packed)
    out_ref[...] = packed                              # single unmasked lane-dense store


@functools.partial(jax.jit,
                   static_argnames=("alpha_t", "size_average", "ignore_index", "tile_m"))
def _logistic_loss_weight_impl(preds, labels, loss_weight, *, alpha_t,
                               size_average, ignore_index, tile_m):
    C = preds.shape[-1]
    preds2 = jnp.asarray(preds, jnp.float32).reshape(-1, C)
    M = preds2.shape[0]
    labels_flat = jnp.asarray(labels, jnp.int32).reshape(-1)
    lw = jnp.asarray(loss_weight, jnp.float32).reshape(-1)
    assert len(alpha_t) == C, "num_classes / alpha length must match preds' last dim"

    equal_alpha = all(a == alpha_t[0] for a in alpha_t)

    # ---- tile geometry: TM multiple of 1024 (=8*128) so tiles stay vreg-dense;
    #      keep >=2 tiles when worthwhile so the 'parallel' axis spans both v7x TCs.
    m_min = _round_up(M, 1024)
    nt = max(1, _cdiv(m_min, _round_up(int(tile_m), 1024)))
    if nt == 1 and m_min >= 2048:
        nt = 2
    TM = _round_up(_cdiv(m_min, nt), 1024)
    M_pad = _round_up(M, TM)
    num_tiles = M_pad // TM
    TR = TM // 128
    R_total = M_pad // 128

    # ---- host-side relayout (inside jit => fused copies, reshapes are free).
    pad = M_pad - M
    preds_t = jnp.swapaxes(preds2, 0, 1)                       # [C, M]
    if pad:
        preds_t = jnp.pad(preds_t, ((0, 0), (0, pad)))
        labels_flat = jnp.pad(labels_flat, (0, pad), constant_values=ignore_index)
        lw = jnp.pad(lw, (0, pad))
    preds_in = preds_t.reshape(C, R_total, 128)
    labels_in = labels_flat.reshape(R_total, 128)
    lw_in = lw.reshape(R_total, 128)

    n_rows = 3 if equal_alpha else 2 * C + 1
    R_out = _round_up(n_rows, 8)

    kernel = functools.partial(_logistic_partials_kernel, alpha_t=alpha_t,
                               ignore_index=ignore_index, equal_alpha=equal_alpha)

    parts = pl.pallas_call(
        kernel,
        out_shape=jax.ShapeDtypeStruct((num_tiles * R_out, 128), jnp.float32),
        grid=(num_tiles,),
        in_specs=[
            pl.BlockSpec((C, TR, 128), lambda i: (0, i, 0)),   # preds (class-major, dense)
            pl.BlockSpec((TR, 128), lambda i: (i, 0)),         # labels
            pl.BlockSpec((TR, 128), lambda i: (i, 0)),         # loss_weight
        ],
        out_specs=pl.BlockSpec((R_out, 128), lambda i: (i, 0)),
        compiler_params=pltpu.CompilerParams(
            dimension_semantics=("parallel",)),                # independent tiles
    )(preds_in, labels_in, lw_in)

    # ---- tiny finalize (O(num_tiles * R_out * 128) work) in the wrapper ----
    parts = parts.reshape(num_tiles, R_out, 128)
    if equal_alpha:
        A = jnp.sum(parts[:, 0, :])              # sum_i lwm[i] * g(ps[i] - a)
        n_kept = jnp.sum(parts[:, 1, :])         # kept sample count
        S = jnp.sum(parts[:, 2, :])              # sum_i lwm[i]
        h0 = _g_scalar(1.0 - alpha_t[0])
        total = BETA_CONST * (n_kept * A - S * n_kept * h0)
    else:
        A = jnp.sum(parts[:, 0:C, :], axis=(0, 2))             # [C]
        n = jnp.sum(parts[:, C:2 * C, :], axis=(0, 2))         # [C]
        S = jnp.sum(parts[:, 2 * C, :])
        h = jnp.asarray([_g_scalar(1.0 - a) for a in alpha_t], jnp.float32)
        total = BETA_CONST * (jnp.dot(n, A) - S * jnp.dot(n, h))
        n_kept = jnp.sum(n)

    if size_average:
        # TODO(synk): if ALL labels are ignored this divides by zero, matching the
        # degenerate behaviour of the PyTorch reference (mean over an empty set).
        return total / (n_kept * n_kept)
    return total


def logistic_loss_weight(preds, labels, loss_weight, *, alpha=0.3, num_classes=3,
                         size_average=True, ignore_index=-1, tile_m=32768):
    """Pallas-backed forward pass of the PyTorch `logistic_loss_weight` module."""
    # module __init__: scalar alpha -> full(num_classes, alpha); list -> as given.
    if isinstance(alpha, (list, tuple, np.ndarray)):
        alpha_t = tuple(float(a) for a in alpha)
        assert len(alpha_t) == num_classes
    else:
        alpha_t = (float(alpha),) * int(num_classes)
    return _logistic_loss_weight_impl(
        preds, labels, loss_weight, alpha_t=alpha_t,
        size_average=bool(size_average), ignore_index=int(ignore_index),
        tile_m=int(tile_m))


def _reference_numpy(preds, labels, loss_weight, alpha=0.3, num_classes=3,
                     size_average=True, ignore_index=-1):
    """Direct NumPy transcription of the PyTorch forward (for validation)."""
    preds = np.asarray(preds, np.float32).reshape(-1, preds.shape[-1])
    labels = np.asarray(labels).reshape(-1)
    keep = np.where(labels != ignore_index)[0]
    preds = preds[keep]
    labels = labels[keep]
    ex = np.exp(preds - preds.max(axis=1, keepdims=True))
    sm = ex / ex.sum(axis=1, keepdims=True)
    ps = sm[np.arange(len(labels)), labels][:, None]             # [N, 1]
    if isinstance(alpha, (list, tuple, np.ndarray)):
        alpha_v = np.asarray(alpha, np.float32)
    else:
        alpha_v = np.full((num_classes,), alpha, np.float32)
    a = alpha_v[labels]                                          # [N]
    Rc, P0c, Kc, beta = R_CONST, P0_CONST, K_CONST, BETA_CONST
    h = Kc * P0c * np.exp(-Rc * (1 - a)) / (Kc + P0c * (np.exp(-Rc * (1 - a)) - 1))
    L = (Kc * P0c * np.exp(-Rc * (ps - a)) /
         (Kc + P0c * (np.exp(-Rc * (ps - a)) - 1)) - h) * beta   # [N, N]
    lw = np.asarray(loss_weight, np.float32)
    W = lw * L.T
    return np.float32(W.mean() if size_average else W.sum())


if __name__ == "__main__":
    key = jax.random.PRNGKey(0)
    kp, kl, kw = jax.random.split(key, 3)
    B, Nboxes, C = 2, 8, 3                      # preds: [B, N, C]; labels: [B, N]
    preds = jax.random.normal(kp, (B, Nboxes, C), jnp.float32)
    labels = jax.random.randint(kl, (B, Nboxes), 0, C, jnp.int32)
    loss_weight = jax.random.uniform(kw, (B * Nboxes,), jnp.float32, 0.5, 1.5)

    # --- equal-alpha fast path, size_average=True (mean) ---
    out_mean = jax.block_until_ready(logistic_loss_weight(preds, labels, loss_weight))
    ref_mean = _reference_numpy(np.asarray(preds), np.asarray(labels),
                                np.asarray(loss_weight), size_average=True)
    assert np.allclose(np.asarray(out_mean), ref_mean, rtol=1e-4, atol=1e-5), \
        (np.asarray(out_mean), ref_mean)

    # --- equal-alpha fast path, size_average=False (sum) ---
    out_sum = jax.block_until_ready(
        logistic_loss_weight(preds, labels, loss_weight, size_average=False))
    ref_sum = _reference_numpy(np.asarray(preds), np.asarray(labels),
                               np.asarray(loss_weight), size_average=False)
    assert np.allclose(np.asarray(out_sum), ref_sum, rtol=1e-4, atol=1e-4), \
        (np.asarray(out_sum), ref_sum)

    # --- heterogeneous alpha (general per-class path) ---
    alpha_list = [0.25, 0.3, 0.35]
    out_gen = jax.block_until_ready(
        logistic_loss_weight(preds, labels, loss_weight, alpha=alpha_list))
    ref_gen = _reference_numpy(np.asarray(preds), np.asarray(labels),
                               np.asarray(loss_weight), alpha=alpha_list,
                               size_average=True)
    assert np.allclose(np.asarray(out_gen), ref_gen, rtol=1e-4, atol=1e-5), \
        (np.asarray(out_gen), ref_gen)

    # --- multi-tile path (ragged M, forced >=2 tiles, padded tail masked) ---
    k2p, k2l, k2w = jax.random.split(jax.random.PRNGKey(1), 3)
    B2, N2 = 2, 1500                            # M = 3000 -> 2 tiles of TM=2048
    preds2 = jax.random.normal(k2p, (B2, N2, C), jnp.float32)
    labels2 = jax.random.randint(k2l, (B2, N2), 0, C, jnp.int32)
    lw2 = jax.random.uniform(k2w, (B2 * N2,), jnp.float32, 0.5, 1.5)
    out_big = jax.block_until_ready(
        logistic_loss_weight(preds2, labels2, lw2, size_average=False))
    ref_big = _reference_numpy(np.asarray(preds2), np.asarray(labels2),
                               np.asarray(lw2), size_average=False)
    assert np.allclose(np.asarray(out_big), ref_big, rtol=1e-4, atol=1e-3), \
        (np.asarray(out_big), ref_big)

    print("KERNEL_OK")
</pallas_src>

<mosaic_0001>
module attributes {stable_mosaic.version = 11 : i64} {
  func.func @_logistic_partials_kernel(%arg0: i32, %arg1: memref<3x8x128xf32, #tpu.memory_space<vmem>>, %arg2: memref<8x128xi32, #tpu.memory_space<vmem>>, %arg3: memref<8x128xf32, #tpu.memory_space<vmem>>, %arg4: memref<8x128xf32, #tpu.memory_space<vmem>>) attributes {dimension_semantics = [#tpu.dimension_semantics<parallel>], iteration_bounds = array<i64: 1>, scalar_prefetch = 0 : i64, scratch_operands = 0 : i64, tpu.core_type = #tpu.core_type<tc>, window_params = [{transform_indices = @transform_0, window_bounds = array<i64: 3, 8, 128>}, {transform_indices = @transform_1, window_bounds = array<i64: 8, 128>}, {transform_indices = @transform_2, window_bounds = array<i64: 8, 128>}, {transform_indices = @transform_3, window_bounds = array<i64: 8, 128>}]} {
    %c0 = arith.constant 0 : index
    %c0_0 = arith.constant 0 : index
    %0 = vector.load %arg2[%c0, %c0_0] : memref<8x128xi32, #tpu.memory_space<vmem>>, vector<8x128xi32>
    %c0_1 = arith.constant 0 : index
    %c0_2 = arith.constant 0 : index
    %1 = vector.load %arg3[%c0_1, %c0_2] : memref<8x128xf32, #tpu.memory_space<vmem>>, vector<8x128xf32>
    %c-1_i32 = arith.constant -1 : i32
    %2 = vector.broadcast %c-1_i32 : i32 to vector<8x128xi32>
    %3 = arith.cmpi ne, %0, %2 : vector<8x128xi32>
    %4 = arith.extui %3 : vector<8x128xi1> to vector<8x128xi32>
    %5 = arith.sitofp %4 : vector<8x128xi32> to vector<8x128xf32>
    %6 = arith.mulf %1, %5 : vector<8x128xf32>
    %c0_3 = arith.constant 0 : index
    %c0_4 = arith.constant 0 : index
    %c0_5 = arith.constant 0 : index
    %7 = vector.load %arg1[%c0_3, %c0_4, %c0_5] : memref<3x8x128xf32, #tpu.memory_space<vmem>>, vector<1x8x128xf32>
    %8 = vector.shape_cast %7 : vector<1x8x128xf32> to vector<8x128xf32>
    %c1 = arith.constant 1 : index
    %c0_6 = arith.constant 0 : index
    %c0_7 = arith.constant 0 : index
    %9 = vector.load %arg1[%c1, %c0_6, %c0_7] : memref<3x8x128xf32, #tpu.memory_space<vmem>>, vector<1x8x128xf32>
    %10 = vector.shape_cast %9 : vector<1x8x128xf32> to vector<8x128xf32>
    %c2 = arith.constant 2 : index
    %c0_8 = arith.constant 0 : index
    %c0_9 = arith.constant 0 : index
    %11 = vector.load %arg1[%c2, %c0_8, %c0_9] : memref<3x8x128xf32, #tpu.memory_space<vmem>>, vector<1x8x128xf32>
    %12 = vector.shape_cast %11 : vector<1x8x128xf32> to vector<8x128xf32>
    %13 = arith.maximumf %8, %10 : vector<8x128xf32>
    %14 = arith.maximumf %13, %12 : vector<8x128xf32>
    %15 = arith.subf %8, %14 : vector<8x128xf32>
    %16 = math.exp %15 : vector<8x128xf32>
    %17 = arith.subf %10, %14 : vector<8x128xf32>
    %18 = math.exp %17 : vector<8x128xf32>
    %19 = arith.subf %12, %14 : vector<8x128xf32>
    %20 = math.exp %19 : vector<8x128xf32>
    %21 = arith.addf %16, %18 : vector<8x128xf32>
    %22 = arith.addf %21, %20 : vector<8x128xf32>
    %c0_i32 = arith.constant 0 : i32
    %23 = vector.broadcast %c0_i32 : i32 to vector<8x128xi32>
    %24 = arith.cmpi eq, %0, %23 : vector<8x128xi32>
    %c1_i32 = arith.constant 1 : i32
    %25 = vector.broadcast %c1_i32 : i32 to vector<8x128xi32>
    %26 = arith.cmpi eq, %0, %25 : vector<8x128xi32>
    %c2_i32 = arith.constant 2 : i32
    %27 = vector.broadcast %c2_i32 : i32 to vector<8x128xi32>
    %28 = arith.cmpi eq, %0, %27 : vector<8x128xi32>
    %cst = arith.constant 0.000000e+00 : f32
    %29 = vector.broadcast %cst : f32 to vector<8x128xf32>
    %30 = arith.select %24, %16, %29 : vector<8x128xi1>, vector<8x128xf32>
    %31 = arith.select %26, %18, %30 : vector<8x128xi1>, vector<8x128xf32>
    %32 = arith.select %28, %20, %31 : vector<8x128xi1>, vector<8x128xf32>
    %33 = tpu.reciprocal %22 {approx = true} : vector<8x128xf32> -> vector<8x128xf32>
    %34 = arith.mulf %22, %33 : vector<8x128xf32>
    %cst_10 = arith.constant 2.000000e+00 : f32
    %35 = vector.broadcast %cst_10 : f32 to vector<8x128xf32>
    %36 = arith.subf %35, %34 : vector<8x128xf32>
    %37 = arith.mulf %33, %36 : vector<8x128xf32>
    %38 = arith.mulf %32, %37 : vector<8x128xf32>
    %cst_11 = arith.constant 3.000000e-01 : f32
    %39 = vector.broadcast %cst_11 : f32 to vector<8x128xf32>
    %40 = arith.subf %38, %39 : vector<8x128xf32>
    %cst_12 = arith.constant 5.493050e+00 : f32
    %41 = vector.broadcast %cst_12 : f32 to vector<8x128xf32>
    %42 = arith.mulf %41, %40 : vector<8x128xf32>
    %43 = math.tanh %42 : vector<8x128xf32>
    %cst_13 = arith.constant 1.000000e+00 : f32
    %44 = vector.broadcast %cst_13 : f32 to vector<8x128xf32>
    %45 = arith.subf %44, %43 : vector<8x128xf32>
    %cst_14 = arith.constant 5.000000e-01 : f32
    %46 = vector.broadcast %cst_14 : f32 to vector<8x128xf32>
    %47 = arith.mulf %46, %45 : vector<8x128xf32>
    %48 = arith.mulf %6, %47 : vector<8x128xf32>
    %cst_15 = arith.constant dense<0.000000e+00> : vector<128xf32>
    %49 = vector.multi_reduction <add>, %48, %cst_15 [0] : vector<8x128xf32> to vector<128xf32>
    %50 = vector.shape_cast %49 : vector<128xf32> to vector<1x128xf32>
    %cst_16 = arith.constant dense<0.000000e+00> : vector<128xf32>
    %51 = vector.multi_reduction <add>, %5, %cst_16 [0] : vector<8x128xf32> to vector<128xf32>
    %52 = vector.shape_cast %51 : vector<128xf32> to vector<1x128xf32>
    %cst_17 = arith.constant dense<0.000000e+00> : vector<128xf32>
    %53 = vector.multi_reduction <add>, %6, %cst_17 [0] : vector<8x128xf32> to vector<128xf32>
    %54 = vector.shape_cast %53 : vector<128xf32> to vector<1x128xf32>
    %55 = tpu.iota {dimensions = array<i32: 0>} : vector<8x128xi32>
    %cst_18 = arith.constant 0.000000e+00 : f32
    %56 = vector.broadcast %cst_18 : f32 to vector<8x128xf32>
    %c0_i32_19 = arith.constant 0 : i32
    %57 = vector.broadcast %c0_i32_19 : i32 to vector<8x128xi32>
    %58 = arith.cmpi eq, %55, %57 : vector<8x128xi32>
    %59 = vector.shape_cast %50 : vector<1x128xf32> to vector<1x128xf32>
    %60 = vector.broadcast %59 : vector<1x128xf32> to vector<8x128xf32>
    %61 = arith.select %58, %60, %56 : vector<8x128xi1>, vector<8x128xf32>
    %c1_i32_20 = arith.constant 1 : i32
    %62 = vector.broadcast %c1_i32_20 : i32 to vector<8x128xi32>
    %63 = arith.cmpi eq, %55, %62 : vector<8x128xi32>
    %64 = vector.shape_cast %52 : vector<1x128xf32> to vector<1x128xf32>
    %65 = vector.broadcast %64 : vector<1x128xf32> to vector<8x128xf32>
    %66 = arith.select %63, %65, %61 : vector<8x128xi1>, vector<8x128xf32>
    %c2_i32_21 = arith.constant 2 : i32
    %67 = vector.broadcast %c2_i32_21 : i32 to vector<8x128xi32>
    %68 = arith.cmpi eq, %55, %67 : vector<8x128xi32>
    %69 = vector.shape_cast %54 : vector<1x128xf32> to vector<1x128xf32>
    %70 = vector.broadcast %69 : vector<1x128xf32> to vector<8x128xf32>
    %71 = arith.select %68, %70, %66 : vector<8x128xi1>, vector<8x128xf32>
    %c0_22 = arith.constant 0 : index
    %c0_23 = arith.constant 0 : index
    %72 = vector.load %arg4[%c0_22, %c0_23] : memref<8x128xf32, #tpu.memory_space<vmem>>, vector<8x128xf32>
    tpu.vector_store %arg4[%c0_22, %c0_23], %71 {strides = array<i32>} : memref<8x128xf32, #tpu.memory_space<vmem>>, vector<8x128xf32>,
    return
  }
  func.func @transform_0(%arg0: i32) -> (i32, i32, i32) {
    %c0_i32 = arith.constant 0 : i32
    %c0_i32_0 = arith.constant 0 : i32
    %c0_i32_1 = arith.constant 0 : i32
    return %c0_i32, %arg0, %c0_i32_0 : i32, i32, i32
  }
  func.func @transform_1(%arg0: i32) -> (i32, i32) {
    %c0_i32 = arith.constant 0 : i32
    %c0_i32_0 = arith.constant 0 : i32
    return %arg0, %c0_i32 : i32, i32
  }
  func.func @transform_2(%arg0: i32) -> (i32, i32) {
    %c0_i32 = arith.constant 0 : i32
    %c0_i32_0 = arith.constant 0 : i32
    return %arg0, %c0_i32 : i32, i32
  }
  func.func @transform_3(%arg0: i32) -> (i32, i32) {
    %c0_i32 = arith.constant 0 : i32
    %c0_i32_0 = arith.constant 0 : i32
    return %arg0, %c0_i32 : i32, i32
  }
}

</mosaic_0001>

<bundles_post_ra>
// kernel: _logistic_loss_weight_impl.1
= control target key start
LH: loop header
LB: loop body
LE: loop exit
PB: predicated region body
PF: predicated region fallthrough
CT: control target
= control target key end

     0   :  { %v101_v28 = vmov 0.0   ;;  %v73_v43 = vlaneseq  ;;  %s140_s0 = inlined_call_operand.vmem [shape: f32[3,8,128], index: 0, kind: input, shape index: {}]   ;;  %s141_s1 = inlined_call_operand.vmem [shape: s32[8,128], index: 1, kind: input, shape index: {}]   ;;  %s142_s2 = inlined_call_operand.vmem [shape: f32[8,128], index: 2, kind: input, shape index: {}]   ;;  %s143_s3 = inlined_call_operand.vmem [shape: f32[8,128], index: 3, kind: output, shape index: {}]  }
   0x1   :  { %v20_v0 = vld [vmem:[%s140_s0] sm:$0xff]  ;;  %v87_v1 = vld [vmem:[%s140_s0 + $0x8] sm:$0xff]  ;;  %v88_v2 = vld [vmem:[%s140_s0 + $0x10] sm:$0xff] }
   0x2   :  { %v25_v3 = vmax.f32 %v20_v0, %v87_v1  ;;  %v14_v16 = vld [vmem:[%s141_s1] sm:$0xff]  ;;  %v74_v48 = vshrl.u32 %v73_v43, 7 }
   0x3   :  { %vm38_vm0 = vcmp.eq.s32.totalorder %v14_v16, 0  ;;  %vm39_vm1 = vcmp.eq.s32.totalorder %v14_v16, 1  ;;  %vm40_vm2 = vcmp.eq.s32.totalorder %v14_v16, 2  ;;  %vm16_vm3 = vcmp.ne.s32.totalorder %v14_v16, 4294967295  ;;  %v15_v27 = vld [vmem:[%s142_s2] sm:$0xff] }
   0x4   :  { %v26_v4 = vmax.f32 %v25_v3, %v88_v2  ;;  %v86_v29 = vsel %vm16_vm3, 1.0, %v101_v28  ;;  %vm75_vm4 = vcmp.eq.s32.totalorder %v74_v48, 0  ;;  %vm77_vm5 = vcmp.eq.s32.totalorder %v74_v48, 1 }
   0x5   :  { %v19_v30 = vmul.f32 %v86_v29, %v15_v27  ;;  %v61_v31 = vrot.slane %v86_v29, 4  ;;  %vm79_vm6 = vcmp.eq.s32.totalorder %v74_v48, 2 }
   0x6   :  { %v27_v5 = vsub.f32 %v20_v0, %v26_v4  ;;  %v30_v6 = vsub.f32 %v87_v1, %v26_v4  ;;  %v33_v7 = vsub.f32 %v88_v2, %v26_v4 }
   0x7   :  { %v67_v32 = vrot.slane %v19_v30, 4  ;;  %v62_v34 = vadd.f32 %v86_v29, %v61_v31 }
   0x8   :  { %v28_v8 = vmul.f32 1.442695, %v27_v5  ;;  %v31_v9 = vmul.f32 1.442695, %v30_v6  ;;  %v34_v10 = vmul.f32 1.442695, %v33_v7 }
   0x9   :  { %v68_v36 = vadd.f32 %v67_v32, %v19_v30  ;;  %v63_v38 = vrot.slane %v62_v34, 2 }
   0xa   :  { %91 = vpow2.f32 %v28_v8 }
   0xb   :  { %93 = vpow2.f32 %v31_v9  ;;  %v69_v40 = vrot.slane %v68_v36, 2  ;;  %v64_v42 = vadd.f32 %v63_v38, %v62_v34 }
   0xc   :  { %95 = vpow2.f32 %v34_v10 }
   0xd   :  { %v70_v45 = vadd.f32 %v69_v40, %v68_v36  ;;  %v65_v47 = vrot.slane %v64_v42, 1 }
   0xf   :  { %v71_v50 = vrot.slane %v70_v45, 1  ;;  %v66_v52 = vadd.f32 %v65_v47, %v64_v42 }
  0x11   :  { %v72_v54 = vadd.f32 %v71_v50, %v70_v45 }
  0x14   :  { %v92_v11 = vpop.eup %91 }
  0x15   :  { %v94_v12 = vpop.eup %93  ;;  %v41_v17 = vsel %vm38_vm0, %v92_v11, 0.0 }
  0x16   :  { %v96_v13 = vpop.eup %95  ;;  %v36_v14 = vadd.f32 %v94_v12, %v92_v11  ;;  %v42_v19 = vsel %vm39_vm1, %v94_v12, %v41_v17 }
  0x17   :  { %v43_v22 = vsel %vm40_vm2, %v96_v13, %v42_v19 }
  0x18   :  { %v37_v15 = vadd.f32 %v96_v13, %v36_v14 }
  0x1a   :  { %97 = vrcp.f32 %v37_v15 }
  0x24   :  { %v98_v18 = vpop.eup %97 }
  0x25   :  { %v45_v20 = vmul.f32 %v98_v18, %v37_v15 }
  0x27   :  { %v46_v21 = vsub.f32 2.0, %v45_v20 }
  0x29   :  { %v47_v23 = vmul.f32 %v98_v18, %v46_v21 }
  0x2b   :  { %v48_v24 = vmul.f32 %v47_v23, %v43_v22 }
  0x2d   :  { %v89_v25 = vadd.f32 -0.3, %v48_v24 }
  0x2f   :  { %v50_v26 = vmul.f32 5.49305, %v89_v25 }
  0x31   :  { %99 = vtanh.f32 %v50_v26 }
  0x3b   :  { %v100_v33 = vpop.eup %99 }
  0x3c   :  { %v52_v35 = vsub.f32 1.0, %v100_v33 }
  0x3e   :  { %v53_v37 = vmul.f32 0.5, %v52_v35 }
  0x40   :  { %v54_v39 = vmul.f32 %v53_v37, %v19_v30 }
  0x42   :  { %v55_v41 = vrot.slane %v54_v39, 4 }
  0x44   :  { %v56_v44 = vadd.f32 %v55_v41, %v54_v39 }
  0x46   :  { %v57_v46 = vrot.slane %v56_v44, 2 }
  0x48   :  { %v58_v49 = vadd.f32 %v57_v46, %v56_v44 }
  0x4a   :  { %v59_v51 = vrot.slane %v58_v49, 1 }
  0x4c   :  { %v60_v53 = vadd.f32 %v59_v51, %v58_v49 }
  0x4e   :  { %v76_v55 = vsel %vm75_vm4, %v60_v53, 0.0 }
  0x4f   :  { %v78_v56 = vsel %vm77_vm5, %v66_v52, %v76_v55 }
  0x50   :  { %v80_v57 = vsel %vm79_vm6, %v72_v54, %v78_v56 }
  0x51   :  { %81 = vst [vmem:[%s143_s3] sm:$0xff] %v80_v57 }

</bundles_post_ra>
